<compile_context>
chip_gen: v7x
topology: tpu7x:2x2x1
jax: 0.10.0
libtpu: 0.0.40
codegen_flags: <defaults>
</compile_context>

<pallas_src>
import jax
import jax.numpy as jnp
from jax.experimental import pallas as pl
from jax.experimental.pallas import tpu as pltpu


def nn4_kernel(x_ref, w1_ref, b1_ref, w2_ref, b2_ref, w3_ref, b3_ref,
               w4_ref, b4_ref, w5_ref, b5_ref, o_ref):
    cdt = w1_ref.dtype  # compute dtype for MXU inputs (f32 or bf16)

    h = x_ref[...]                                                    # (in, TB)
    # Layers 1-4: MXU matmul with f32 accumulation; bias add + ReLU on the VPU.
    h = jnp.dot(w1_ref[...], h, preferred_element_type=jnp.float32) + b1_ref[...]
    h = jnp.maximum(h, 0.0).astype(cdt)
    h = jnp.dot(w2_ref[...], h, preferred_element_type=jnp.float32) + b2_ref[...]
    h = jnp.maximum(h, 0.0).astype(cdt)
    h = jnp.dot(w3_ref[...], h, preferred_element_type=jnp.float32) + b3_ref[...]
    h = jnp.maximum(h, 0.0).astype(cdt)
    h = jnp.dot(w4_ref[...], h, preferred_element_type=jnp.float32) + b4_ref[...]
    h = jnp.maximum(h, 0.0)                                           # keep f32

    if w5_ref.shape[0] == 1:
        # Final (hidden4 -> 1) layer as a VPU weighted sum + sublane reduce:
        # avoids one MXU pipeline fill/drain per tile.
        w5 = w5_ref[...].astype(jnp.float32)                          # (1, h4)
        out = jnp.sum(w5.T * h, axis=0, keepdims=True) + b5_ref[...]  # (1, TB)
    else:
        out = jnp.dot(w5_ref[...], h.astype(cdt),
                      preferred_element_type=jnp.float32) + b5_ref[...]
    o_ref[...] = out.astype(o_ref.dtype)


def nn4_forward(x, params, *, tile_b=1024, compute_dtype=jnp.float32):
    """x: (B, input_size) f32.  params: list of (W (out,in), b (out,1)) f32."""
    B, in_size = x.shape
    out_size = params[-1][0].shape[0]

    # Batch goes on the lane axis: pad B up to a multiple of 128 and tile it.
    lanes = 128
    padded_b = pl.cdiv(B, lanes) * lanes
    tb = min(tile_b, padded_b)                 # both are multiples of 128
    padded_b = pl.cdiv(padded_b, tb) * tb
    grid = (padded_b // tb,)

    xT = jnp.transpose(x).astype(compute_dtype)
    if padded_b != B:
        xT = jnp.pad(xT, ((0, 0), (0, padded_b - B)))

    flat_args = [xT]
    in_specs = [pl.BlockSpec((in_size, tb), lambda i: (0, i))]
    for w, b in params:
        flat_args.append(w.astype(compute_dtype))   # weights in compute dtype
        in_specs.append(pl.BlockSpec(w.shape, lambda i: (0, 0)))
        flat_args.append(b.astype(jnp.float32))     # biases stay f32
        in_specs.append(pl.BlockSpec(b.shape, lambda i: (0, 0)))

    outT = pl.pallas_call(
        nn4_kernel,
        out_shape=jax.ShapeDtypeStruct((out_size, padded_b), jnp.float32),
        grid=grid,
        in_specs=in_specs,
        out_specs=pl.BlockSpec((out_size, tb), lambda i: (0, i)),
        compiler_params=pltpu.CompilerParams(
            dimension_semantics=("parallel",)),
    )(*flat_args)

    return jnp.transpose(outT[:, :B])               # (B, out_size), f32


def init_params(key, input_size, sizes=(32, 16, 8, 4, 1)):
    """nn.Linear-style init; W stored as (out, in), b as (out, 1)."""
    params = []
    fan_in = input_size
    for out in sizes:
        key, kw, kb = jax.random.split(key, 3)
        bound = 1.0 / float(fan_in) ** 0.5
        W = jax.random.uniform(kw, (out, fan_in), jnp.float32, -bound, bound)
        b = jax.random.uniform(kb, (out, 1), jnp.float32, -bound, bound)
        params.append((W, b))
        fan_in = out
    return params


def nn4_reference(x, params):
    h = x
    for i, (w, b) in enumerate(params):
        h = h @ w.T + b[:, 0]
        if i < len(params) - 1:
            h = jnp.maximum(h, 0.0)
    return h


if __name__ == "__main__":
    key = jax.random.PRNGKey(0)
    key, kx = jax.random.split(key)

    batch, input_size = 8, 16
    x = jax.random.normal(kx, (batch, input_size), jnp.float32)
    params = init_params(key, input_size)

    ref = nn4_reference(x, params)

    # f32 compute path: tight correctness check against the pure-JAX reference.
    out_f32 = jax.block_until_ready(
        nn4_forward(x, params, compute_dtype=jnp.float32))
    assert out_f32.shape == (batch, 1), out_f32.shape
    assert jnp.allclose(out_f32, ref, atol=1e-5, rtol=1e-5), "f32 mismatch"

    # bf16-input path (halved HBM traffic for streamed x / weights, f32 accum).
    out_bf16 = jax.block_until_ready(
        nn4_forward(x, params, compute_dtype=jnp.bfloat16))
    assert out_bf16.shape == (batch, 1), out_bf16.shape
    assert jnp.allclose(out_bf16, ref, atol=5e-2, rtol=5e-2), "bf16 mismatch"

    print("KERNEL_OK")
</pallas_src>

<mosaic_0001>
module attributes {stable_mosaic.version = 11 : i64} {
  func.func @nn4_kernel(%arg0: i32, %arg1: memref<16x128xf32, #tpu.memory_space<vmem>>, %arg2: memref<32x16xf32, #tpu.memory_space<vmem>>, %arg3: memref<32x1xf32, #tpu.memory_space<vmem>>, %arg4: memref<16x32xf32, #tpu.memory_space<vmem>>, %arg5: memref<16x1xf32, #tpu.memory_space<vmem>>, %arg6: memref<8x16xf32, #tpu.memory_space<vmem>>, %arg7: memref<8x1xf32, #tpu.memory_space<vmem>>, %arg8: memref<4x8xf32, #tpu.memory_space<vmem>>, %arg9: memref<4x1xf32, #tpu.memory_space<vmem>>, %arg10: memref<1x4xf32, #tpu.memory_space<vmem>>, %arg11: memref<1x1xf32, #tpu.memory_space<vmem>>, %arg12: memref<1x128xf32, #tpu.memory_space<vmem>>) attributes {dimension_semantics = [#tpu.dimension_semantics<parallel>], iteration_bounds = array<i64: 1>, scalar_prefetch = 0 : i64, scratch_operands = 0 : i64, tpu.core_type = #tpu.core_type<tc>, window_params = [{transform_indices = @transform_0, window_bounds = array<i64: 16, 128>}, {pipeline_mode = #tpu.pipeline_mode<synchronous>, transform_indices = @transform_1, window_bounds = array<i64: 32, 16>}, {pipeline_mode = #tpu.pipeline_mode<synchronous>, transform_indices = @transform_2, window_bounds = array<i64: 32, 1>}, {pipeline_mode = #tpu.pipeline_mode<synchronous>, transform_indices = @transform_3, window_bounds = array<i64: 16, 32>}, {pipeline_mode = #tpu.pipeline_mode<synchronous>, transform_indices = @transform_4, window_bounds = array<i64: 16, 1>}, {pipeline_mode = #tpu.pipeline_mode<synchronous>, transform_indices = @transform_5, window_bounds = array<i64: 8, 16>}, {pipeline_mode = #tpu.pipeline_mode<synchronous>, transform_indices = @transform_6, window_bounds = array<i64: 8, 1>}, {pipeline_mode = #tpu.pipeline_mode<synchronous>, transform_indices = @transform_7, window_bounds = array<i64: 4, 8>}, {pipeline_mode = #tpu.pipeline_mode<synchronous>, transform_indices = @transform_8, window_bounds = array<i64: 4, 1>}, {pipeline_mode = #tpu.pipeline_mode<synchronous>, transform_indices = @transform_9, window_bounds = array<i64: 1, 4>}, {pipeline_mode = #tpu.pipeline_mode<synchronous>, transform_indices = @transform_10, window_bounds = array<i64: 1, 1>}, {transform_indices = @transform_11, window_bounds = array<i64: 1, 128>}]} {
    %c0 = arith.constant 0 : index
    %c0_0 = arith.constant 0 : index
    %0 = vector.load %arg1[%c0, %c0_0] : memref<16x128xf32, #tpu.memory_space<vmem>>, vector<16x128xf32>
    %c0_1 = arith.constant 0 : index
    %c0_2 = arith.constant 0 : index
    %1 = vector.load %arg2[%c0_1, %c0_2] : memref<32x16xf32, #tpu.memory_space<vmem>>, vector<32x16xf32>
    %cst = arith.constant dense<0.000000e+00> : vector<32x128xf32>
    %2 = tpu.matmul %1, %0, %cst {dimension_numbers = #tpu.dot_dimension_numbers<[1], [0], [0], [1], [0, 0, 1, 1], [], []>} : vector<32x16xf32>, vector<16x128xf32>, vector<32x128xf32> -> vector<32x128xf32>
    %c0_3 = arith.constant 0 : index
    %c0_4 = arith.constant 0 : index
    %3 = vector.load %arg3[%c0_3, %c0_4] : memref<32x1xf32, #tpu.memory_space<vmem>>, vector<32x1xf32>
    %4 = vector.broadcast %3 : vector<32x1xf32> to vector<32x128xf32>
    %5 = arith.addf %2, %4 : vector<32x128xf32>
    %cst_5 = arith.constant 0.000000e+00 : f32
    %6 = vector.broadcast %cst_5 : f32 to vector<32x128xf32>
    %7 = arith.maximumf %5, %6 : vector<32x128xf32>
    %c0_6 = arith.constant 0 : index
    %c0_7 = arith.constant 0 : index
    %8 = vector.load %arg4[%c0_6, %c0_7] : memref<16x32xf32, #tpu.memory_space<vmem>>, vector<16x32xf32>
    %cst_8 = arith.constant dense<0.000000e+00> : vector<16x128xf32>
    %9 = tpu.matmul %8, %7, %cst_8 {dimension_numbers = #tpu.dot_dimension_numbers<[1], [0], [0], [1], [0, 0, 1, 1], [], []>} : vector<16x32xf32>, vector<32x128xf32>, vector<16x128xf32> -> vector<16x128xf32>
    %c0_9 = arith.constant 0 : index
    %c0_10 = arith.constant 0 : index
    %10 = vector.load %arg5[%c0_9, %c0_10] : memref<16x1xf32, #tpu.memory_space<vmem>>, vector<16x1xf32>
    %11 = vector.broadcast %10 : vector<16x1xf32> to vector<16x128xf32>
    %12 = arith.addf %9, %11 : vector<16x128xf32>
    %cst_11 = arith.constant 0.000000e+00 : f32
    %13 = vector.broadcast %cst_11 : f32 to vector<16x128xf32>
    %14 = arith.maximumf %12, %13 : vector<16x128xf32>
    %c0_12 = arith.constant 0 : index
    %c0_13 = arith.constant 0 : index
    %15 = vector.load %arg6[%c0_12, %c0_13] : memref<8x16xf32, #tpu.memory_space<vmem>>, vector<8x16xf32>
    %cst_14 = arith.constant dense<0.000000e+00> : vector<8x128xf32>
    %16 = tpu.matmul %15, %14, %cst_14 {dimension_numbers = #tpu.dot_dimension_numbers<[1], [0], [0], [1], [0, 0, 1, 1], [], []>} : vector<8x16xf32>, vector<16x128xf32>, vector<8x128xf32> -> vector<8x128xf32>
    %c0_15 = arith.constant 0 : index
    %c0_16 = arith.constant 0 : index
    %17 = vector.load %arg7[%c0_15, %c0_16] : memref<8x1xf32, #tpu.memory_space<vmem>>, vector<8x1xf32>
    %18 = vector.broadcast %17 : vector<8x1xf32> to vector<8x128xf32>
    %19 = arith.addf %16, %18 : vector<8x128xf32>
    %cst_17 = arith.constant 0.000000e+00 : f32
    %20 = vector.broadcast %cst_17 : f32 to vector<8x128xf32>
    %21 = arith.maximumf %19, %20 : vector<8x128xf32>
    %c0_18 = arith.constant 0 : index
    %c0_19 = arith.constant 0 : index
    %22 = vector.load %arg8[%c0_18, %c0_19] : memref<4x8xf32, #tpu.memory_space<vmem>>, vector<4x8xf32>
    %cst_20 = arith.constant dense<0.000000e+00> : vector<4x128xf32>
    %23 = tpu.matmul %22, %21, %cst_20 {dimension_numbers = #tpu.dot_dimension_numbers<[1], [0], [0], [1], [0, 0, 1, 1], [], []>} : vector<4x8xf32>, vector<8x128xf32>, vector<4x128xf32> -> vector<4x128xf32>
    %c0_21 = arith.constant 0 : index
    %c0_22 = arith.constant 0 : index
    %24 = vector.load %arg9[%c0_21, %c0_22] : memref<4x1xf32, #tpu.memory_space<vmem>>, vector<4x1xf32>
    %25 = vector.broadcast %24 : vector<4x1xf32> to vector<4x128xf32>
    %26 = arith.addf %23, %25 : vector<4x128xf32>
    %cst_23 = arith.constant 0.000000e+00 : f32
    %27 = vector.broadcast %cst_23 : f32 to vector<4x128xf32>
    %28 = arith.maximumf %26, %27 : vector<4x128xf32>
    %c0_24 = arith.constant 0 : index
    %c0_25 = arith.constant 0 : index
    %29 = vector.load %arg10[%c0_24, %c0_25] : memref<1x4xf32, #tpu.memory_space<vmem>>, vector<1x4xf32>
    %30 = tpu.transpose %29, [1, 0] : vector<1x4xf32> -> vector<4x1xf32>
    %31 = vector.broadcast %30 : vector<4x1xf32> to vector<4x128xf32>
    %32 = arith.mulf %31, %28 : vector<4x128xf32>
    %cst_26 = arith.constant dense<0.000000e+00> : vector<128xf32>
    %33 = vector.multi_reduction <add>, %32, %cst_26 [0] : vector<4x128xf32> to vector<128xf32>
    %34 = vector.shape_cast %33 : vector<128xf32> to vector<1x128xf32>
    %c0_27 = arith.constant 0 : index
    %c0_28 = arith.constant 0 : index
    %35 = vector.load %arg11[%c0_27, %c0_28] : memref<1x1xf32, #tpu.memory_space<vmem>>, vector<1x1xf32>
    %36 = vector.broadcast %35 : vector<1x1xf32> to vector<1x128xf32>
    %37 = arith.addf %34, %36 : vector<1x128xf32>
    %c0_29 = arith.constant 0 : index
    %c0_30 = arith.constant 0 : index
    %38 = vector.load %arg12[%c0_29, %c0_30] : memref<1x128xf32, #tpu.memory_space<vmem>>, vector<1x128xf32>
    tpu.vector_store %arg12[%c0_29, %c0_30], %37 {strides = array<i32>} : memref<1x128xf32, #tpu.memory_space<vmem>>, vector<1x128xf32>,
    return
  }
  func.func @transform_0(%arg0: i32) -> (i32, i32) {
    %c0_i32 = arith.constant 0 : i32
    %c0_i32_0 = arith.constant 0 : i32
    return %c0_i32, %arg0 : i32, i32
  }
  func.func @transform_1(%arg0: i32) -> (i32, i32) {
    %c0_i32 = arith.constant 0 : i32
    %c0_i32_0 = arith.constant 0 : i32
    %c0_i32_1 = arith.constant 0 : i32
    return %c0_i32, %c0_i32_0 : i32, i32
  }
  func.func @transform_2(%arg0: i32) -> (i32, i32) {
    %c0_i32 = arith.constant 0 : i32
    %c0_i32_0 = arith.constant 0 : i32
    %c0_i32_1 = arith.constant 0 : i32
    return %c0_i32, %c0_i32_0 : i32, i32
  }
  func.func @transform_3(%arg0: i32) -> (i32, i32) {
    %c0_i32 = arith.constant 0 : i32
    %c0_i32_0 = arith.constant 0 : i32
    %c0_i32_1 = arith.constant 0 : i32
    return %c0_i32, %c0_i32_0 : i32, i32
  }
  func.func @transform_4(%arg0: i32) -> (i32, i32) {
    %c0_i32 = arith.constant 0 : i32
    %c0_i32_0 = arith.constant 0 : i32
    %c0_i32_1 = arith.constant 0 : i32
    return %c0_i32, %c0_i32_0 : i32, i32
  }
  func.func @transform_5(%arg0: i32) -> (i32, i32) {
    %c0_i32 = arith.constant 0 : i32
    %c0_i32_0 = arith.constant 0 : i32
    %c0_i32_1 = arith.constant 0 : i32
    return %c0_i32, %c0_i32_0 : i32, i32
  }
  func.func @transform_6(%arg0: i32) -> (i32, i32) {
    %c0_i32 = arith.constant 0 : i32
    %c0_i32_0 = arith.constant 0 : i32
    %c0_i32_1 = arith.constant 0 : i32
    return %c0_i32, %c0_i32_0 : i32, i32
  }
  func.func @transform_7(%arg0: i32) -> (i32, i32) {
    %c0_i32 = arith.constant 0 : i32
    %c0_i32_0 = arith.constant 0 : i32
    %c0_i32_1 = arith.constant 0 : i32
    return %c0_i32, %c0_i32_0 : i32, i32
  }
  func.func @transform_8(%arg0: i32) -> (i32, i32) {
    %c0_i32 = arith.constant 0 : i32
    %c0_i32_0 = arith.constant 0 : i32
    %c0_i32_1 = arith.constant 0 : i32
    return %c0_i32, %c0_i32_0 : i32, i32
  }
  func.func @transform_9(%arg0: i32) -> (i32, i32) {
    %c0_i32 = arith.constant 0 : i32
    %c0_i32_0 = arith.constant 0 : i32
    %c0_i32_1 = arith.constant 0 : i32
    return %c0_i32, %c0_i32_0 : i32, i32
  }
  func.func @transform_10(%arg0: i32) -> (i32, i32) {
    %c0_i32 = arith.constant 0 : i32
    %c0_i32_0 = arith.constant 0 : i32
    %c0_i32_1 = arith.constant 0 : i32
    return %c0_i32, %c0_i32_0 : i32, i32
  }
  func.func @transform_11(%arg0: i32) -> (i32, i32) {
    %c0_i32 = arith.constant 0 : i32
    %c0_i32_0 = arith.constant 0 : i32
    return %c0_i32, %arg0 : i32, i32
  }
}

</mosaic_0001>

<bundles_post_ra>
// kernel: tpu_custom_call.1
= control target key start
LH: loop header
LB: loop body
LE: loop exit
PB: predicated region body
PF: predicated region fallthrough
CT: control target
= control target key end

     0   :  { %s755_s0 = inlined_call_operand.vmem [shape: f32[16,128], index: 0, kind: input, shape index: {}]   ;;  %s756_s1 = inlined_call_operand.vmem [shape: f32[32,16], index: 1, kind: input, shape index: {}]   ;;  %s757_s2 = inlined_call_operand.vmem [shape: f32[32,1], index: 2, kind: input, shape index: {}]   ;;  %s758_s3 = inlined_call_operand.vmem [shape: f32[16,32], index: 3, kind: input, shape index: {}]   ;;  %s759_s4 = inlined_call_operand.vmem [shape: f32[16,1], index: 4, kind: input, shape index: {}]   ;;  %s760_s5 = inlined_call_operand.vmem [shape: f32[8,16], index: 5, kind: input, shape index: {}]   ;;  %s761_s6 = inlined_call_operand.vmem [shape: f32[8,1], index: 6, kind: input, shape index: {}]   ;;  %s762_s7 = inlined_call_operand.vmem [shape: f32[4,8], index: 7, kind: input, shape index: {}]   ;;  %s763_s8 = inlined_call_operand.vmem [shape: f32[4,1], index: 8, kind: input, shape index: {}]   ;;  %s764_s9 = inlined_call_operand.vmem [shape: f32[1,4], index: 9, kind: input, shape index: {}]   ;;  %s765_s10 = inlined_call_operand.<no memory space> [shape: f32[1,1], index: 10, kind: input, shape index: {}]   ;;  %s766_s11 = inlined_call_operand.hbm [shape: f32[1,128], index: 11, kind: output, shape index: {}]  }
   0x1   :  { %v16_v0 = vstv %s765_s10 }
   0x2   :  { %17 = vst [vmem:[#allocation2] sm:$0x1] %v16_v0 }
   0x3   :  { %v49_v1 = vld [vmem:[%s757_s2 + $0x10] sm:$0xff]  ;;  %v41_v2 = vld [vmem:[%s755_s0] sm:$0xff]  ;;  %v42_v3 = vld [vmem:[%s755_s0 + $0x8] sm:$0xff]  ;;  %vm71_vm0 = vcmask 130048   ;;  %v611_v4 = vmov 0  }
   0x4   :  { %586 = vset.pattern.permute.xlu1 %v611_v4  ;;  %v565_v5 = vpack.c.bf16 %v42_v3, %v41_v2  ;;  %v43_v6 = vld [vmem:[%s756_s1] sm:$0xff]  ;;  %585 = vset.pattern.permute.xlu0 %v611_v4  ;;  %v50_v7 = vld [vmem:[%s757_s2 + $0x18] sm:$0xff]  ;;  %v44_v9 = vld [vmem:[%s756_s1 + $0x8] sm:$0xff] }
   0x5   :  { %63 = vperm.xlu1 %586, %v49_v1   ;;  %536 = vmatprep.mubr.msk.f32.mxu0 %vm71_vm0, %v43_v6  ;;  %v47_v8 = vld [vmem:[%s757_s2] sm:$0xff]  ;;  %v45_v10 = vld [vmem:[%s756_s1 + $0x10] sm:$0xff]  ;;  %v48_v11 = vld [vmem:[%s757_s2 + $0x8] sm:$0xff] }
   0x6   :  { %566 = vmatprep.subr.bf16.mxu0 %v565_v5  ;;  %53 = vperm.xlu0 %585, %v47_v8  }
   0x7   :  { %568 = vmatpush3.bf16.msra.mxu0 %v565_v5 }
   0x8   :  { %18 = vsyncpa [#allocation4], 0  ;;  %v176_v12 = vld [vmem:[%s759_s4 + $0x8] sm:$0xff]  ;;  %v46_v13 = vld [vmem:[%s756_s1 + $0x18] sm:$0xff]  ;;  %vm187_vm1 = vcmask 261120   ;;  %v612_v41 = vmov 0.0|0.0   ;;  %v487_v1 = vlaneseq }
   0x9   :  { %68 = vperm.xlu1 %586, %v50_v7   ;;  %v175_v14 = vld [vmem:[%s759_s4] sm:$0xff]  ;;  %v174_v40 = vld [vmem:[%s758_s3 + $0x8] sm:$0xff]  ;;  %577 = vmatprep.subr.bf16.mxu0 %v612_v41  ;;  %vm613_vm2 = vmmov 0   ;;  %v614_v42 = vmov 0.0   ;;  %vm359_vm3 = vcmask 64512   ;;  %vm473_vm4 = vcmask 1043456  }
   0xa   :  { %537 = vmatmul.mubr.msk.f32.vlgmr.msra.gmra.mrb[0].mxu0 %vm71_vm0, %v44_v9  ;;  %58 = vperm.xlu0 %585, %v48_v11   ;;  %v272_v15 = vld [vmem:[%s761_s6] sm:$0xff]  ;;  %v488_v4 = vshrl.u32 %v487_v1, 7 }
   0xb   :  { %539 = vmatprep.mubr.msk.f32.mxu0 %vm71_vm0, %v45_v10  ;;  %v353_v16 = vld [vmem:[%s763_s8] sm:$0xf] }
   0xc   :  { %v434_v17 = vld [vmem:[%s764_s9] sm:$0x1]  ;;  %v489_v7 = vsub.s32 0, %v488_v4 }
   0xd   :  { %184 = vperm.xlu1 %586, %v176_v12   ;;  %v173_v18 = vld [vmem:[%s758_s3] sm:$0xff] }
   0xe   :  { %540 = vmatmul.mubr.msk.f32.gmra.mrb[2].mxu0 %vm71_vm0, %v46_v13  ;;  %179 = vperm.xlu0 %585, %v175_v14   ;;  %v481_v23 = vld [vmem:[#allocation2] sm:$0x1] }
   0xf   :  { %550 = vmatprep.mubr.msk.f32.mxu1 %vm187_vm1, %v173_v18  ;;  %557 = vmatprep.mubr.msk.f32.mxu0 %vm613_vm2, %v614_v42  ;;  %v271_v51 = vld [vmem:[%s760_s5] sm:$0xff]  ;;  %s615_s5 = smov [#allocation3]  }
  0x10   :  { %v352_v57 = vld [vmem:[%s762_s7] sm:$0xf]  ;;  %s499_s7 = sshll.u32 %s615_s5, 4  ;;  %s500_s7 = int_to_ptr.vmem [resolvable:$true] %s499_s7 }
  0x11   :  { %s587_s28 = scalar_lea.vmem %s500_s7, 16  ;;  %s591_s29 = scalar_lea.vmem %s500_s7, 32 }
  0x12   :  { %275 = vperm.xlu0 %585, %v272_v15   ;;  %p588_p0 = scmp.ne.s32.totalorder %s500_s7, %s587_s28  ;;  %p592_p1 = scmp.lt.s32.totalorder %s500_s7, %s500_s7 }
  0x13   :  { %p593_p2 = scmp.lt.s32.totalorder %s591_s29, %s587_s28 }
  0x15   :  { %p594_p3 = por %p593_p2, %p592_p1 }
  0x16   :  { %356 = vperm.xlu0 %585, %v353_v16  }
  0x17   :  { %p595_p4 = pnand %p594_p3, %p588_p0 }
  0x36   :  { %435 = vxpose.xlu1.b32.start.end [1/1] (short) (narrow) %v434_v17, 8 }
  0x84   :  { %v64_v19 = vpop.permute.xlu1 %63 }
  0x85   :  { %v54_v24 = vpop.permute.xlu0 %53 }
  0x88   :  { %v69_v20 = vpop.permute.xlu1 %68 }
  0x89   :  { %v59_v25 = vpop.permute.xlu0 %58 }
  0x8c   :  { %v185_v21 = vpop.permute.xlu1 %184 }
  0x8d   :  { %v180_v44 = vpop.permute.xlu0 %179 }
  0x91   :  { %v276_v52 = vpop.permute.xlu0 %275 }
  0x95   :  { %v357_v58 = vpop.permute.xlu0 %356 }
  0xb6   :  { %v451_v22 = vpop.trf.xlu1 }
  0xb7   :  { %469 = vperm.xlu0 %585, %v451_v22  }
  0xbb   :  { %484 = vperm.xlu0 %585, %v481_v23  }
  0xdd   :  { %v538_v26 = vpop.f32.mrb[0].mxu0 }
  0xde   :  { %v156_v27 = vadd.f32 %v538_v26, %v59_v25  ;;  %v150_v28 = vpop.f32.mrb[1].mxu0 }
  0xdf   :  { %v151_v29 = vadd.f32 %v150_v28, %v54_v24 }
  0xe0   :  { %v170_v30 = vmax.f32 %v156_v27, 0.0 }
  0xe1   :  { %v169_v31 = vmax.f32 %v151_v29, 0.0  ;;  %v541_v32 = vpop.f32.mrb[2].mxu0 }
  0xe2   :  { %v166_v33 = vadd.f32 %v541_v32, %v69_v20  ;;  %v160_v34 = vpop.f32.mrb[3].mxu0 }
  0xe3   :  { %v161_v35 = vadd.f32 %v160_v34, %v64_v19  ;;  %v569_v36 = vpack.c.bf16 %v170_v30, %v169_v31 }
  0xe4   :  { %v172_v37 = vmax.f32 %v166_v33, 0.0 }
  0xe5   :  { %v171_v38 = vmax.f32 %v161_v35, 0.0  ;;  %570 = vmatprep.subr.bf16.mxu1 %v569_v36 }
  0xe6   :  { %572 = vmatpush3.bf16.msra.mxu1 %v569_v36 }
  0xe7   :  { %v573_v39 = vpack.c.bf16 %v172_v37, %v171_v38 }
  0xe9   :  { %574 = vmatprep.subr.bf16.mxu1 %v573_v39 }
  0xea   :  { %576 = vmatpush3.bf16.msra.mxu1 %v573_v39 }
  0xeb   :  { %560 = vmatprep.subr.mxu1 %v614_v42 }
  0xed   :  { %551 = vmatmul.mubr.msk.f32.vlgmr.msra.gmra.mrb[0].mxu1 %vm187_vm1, %v174_v40 }
  0xee   :  { %562 = vmatprep.mubr.msk.f32.mxu1 %vm613_vm2, %v614_v42 }
 0x136   :  { %v470_v63 = vpop.permute.xlu0 %469 }
 0x13a   :  { %v485_v9 = vpop.permute.xlu0 %484 }
 0x13b   :  { %v490_v11 = vrot.slane %v485_v9, %v489_v7 }
 0x1c0   :  { %v552_v43 = vpop.f32.mrb[0].mxu1 }
 0x1c1   :  { %v266_v45 = vadd.f32 %v552_v43, %v185_v21  ;;  %v260_v46 = vpop.f32.mrb[1].mxu1 }
 0x1c2   :  { %v261_v47 = vadd.f32 %v260_v46, %v180_v44 }
 0x1c3   :  { %v270_v48 = vmax.f32 %v266_v45, 0.0 }
 0x1c4   :  { %v269_v49 = vmax.f32 %v261_v47, 0.0 }
 0x1c6   :  { %v578_v50 = vpack.c.bf16 %v270_v48, %v269_v49 }
 0x1c8   :  { %579 = vmatpush3.bf16.msra.mxu0 %v578_v50 }
 0x1cb   :  { %558 = vmatmul.mubr.msk.f32.vlgmr.msra.gmra.mrb[4].mxu0 %vm71_vm0, %v271_v51 }
 0x29e   :  { %v347_v53 = vpop.f32.mrb[4].mxu0 }
 0x29f   :  { %v348_v54 = vadd.f32 %v347_v53, %v276_v52  ;;  %v559_v55 = vpop.f32.mrb[5].mxu0 }
 0x2a1   :  { %v351_v56 = vmax.f32 %v348_v54, 0.0 }
 0x2a3   :  { %561 = vmatpush3.msra.mxu1 %v351_v56 }
 0x2a4   :  { %563 = vmatmul.mubr.msk.f32.vlgmr.msra.gmra.mrb[2].mxu1 %vm359_vm3, %v352_v57 }
 0x377   :  { %v429_v59 = vpop.f32.mrb[2].mxu1 }
 0x378   :  { %v430_v60 = vadd.f32 %v429_v59, %v357_v58  ;;  %v564_v61 = vpop.f32.mrb[3].mxu1 }
 0x37a   :  { %v433_v62 = vmax.f32 %v430_v60, 0.0 }
 0x37c   :  { %v472_v0 = vmul.f32 %v470_v63, %v433_v62 }
 0x37e   :  { %v474_v2 = vsel %vm473_vm4, %v472_v0, 0.0 }
 0x37f   :  { %v475_v3 = vrot.slane %v474_v2, 4 }
 0x381   :  { %v476_v5 = vadd.f32 %v475_v3, %v474_v2 }
 0x383   :  { %v477_v6 = vrot.slane %v476_v5, 2 }
 0x385   :  { %v478_v8 = vadd.f32 %v477_v6, %v476_v5 }
 0x387   :  { %v479_v10 = vrot.slane %v478_v8, 1 }
 0x389   :  { %v480_v12 = vadd.f32 %v479_v10, %v478_v8 }
 0x38b   :  { %v491_v13 = vadd.f32 %v490_v11, %v480_v12 }
 0x38d   :  { %492 = vst [vmem:[#allocation3] sm:$0x1] %v491_v13 }
 0x38e   :  { %598 = shalt.err (!%p595_p4)
}
 0x38f   :  { %s599_s12 = scalar_lea.hbm %s766_s11, 16 }
 0x390   :  { %p600_p5 = scmp.ne.s32.totalorder %s766_s11, %s599_s12  ;;  %p603_p6 = scmp.lt.u32.totalorder %s599_s12, %s766_s11 }
 0x392   :  { %p605_p7 = pnand %p603_p6, %p600_p5 }
 0x394   :  { %608 = shalt.err (!%p605_p7)
}
 0x395   :  { %502 = dma.vmem_to_hbm [thread:$0]  %s500_s7, 16, %s766_s11, [#allocation4]  }
 0x396   :  { %609 = dma.done.wait [#allocation4], 16  }
 0x397   :  { %610 = vsyncadd [#allocation4], 4294967280 }
 0x398   :  { %506 = vsyncpa [#allocation4], 1 }

</bundles_post_ra>
